<compile_context>
chip_gen: v7x
topology: tpu7x:2x2x1
jax: 0.10.0
libtpu: 0.0.40
codegen_flags: <defaults>
</compile_context>

<pallas_src>
import jax
import jax.numpy as jnp
from jax.experimental import pallas as pl
from jax.experimental.pallas import tpu as pltpu


# Packed-parameter slab (f32, 64 x 128).  Every tensor starts on an 8-row
# boundary; kernel slices use multiple-of-8 row extents, zero padding makes
# the padded math exact.
#   rows  0:20, cols 0:d_in -> W1 (20, d_in)   (kernel reads rows 0:24)
#   rows  0:20, col  124    -> b1 (20, 1)      (kernel reads rows 0:24)
#   rows 24:34, cols 0:20   -> W2 (10, 20)     (kernel reads rows 24:40, cols 0:24)
#   rows 24:34, col  124    -> b2 (10, 1)      (kernel reads rows 24:40)
#   rows 40:50, col  0      -> w3 (10, 1)      (kernel reads rows 40:56)
#   row  40,    col  124    -> b3 (1, 1)
_SLAB_R = 64
_SLAB_C = 128
_BIAS_COL = 124
_MAX_D_IN = 120


def _round_up(n, m):
    return ((n + m - 1) // m) * m


def _cdiv(a, b):
    return (a + b - 1) // b


def _make_kernel(d_in):
    def kernel(x_ref, p_ref, o_ref):
        # x_ref: (d_in, TB) feature-major input tile (f32 or bf16, lane-dense batch)
        # p_ref: (64, 128) packed f32 parameter slab, resident across the grid
        # o_ref: (1, TB) f32 output tile
        x = x_ref[...]

        # 8-row-aligned, multiple-of-8-extent weight slices (zero padded).
        w1 = p_ref[0:24, 0:d_in].astype(x.dtype)        # (24, d_in), rows 20: zero
        b1 = p_ref[0:24, _BIAS_COL:_BIAS_COL + 1]       # (24, 1)
        w2 = p_ref[24:40, 0:24]                         # (16, 24), pad rows/cols zero
        b2 = p_ref[24:40, _BIAS_COL:_BIAS_COL + 1]      # (16, 1)
        w3 = p_ref[40:56, 0:1]                          # (16, 1), rows 50: zero
        b3 = p_ref[40:41, _BIAS_COL:_BIAS_COL + 1]      # (1, 1)

        # Layers 1 & 2: Linear + ReLU (Dropout = identity at inference).
        # MXU matmuls with the batch on the 128-lane axis, f32 accumulation.
        h1 = jnp.maximum(
            jnp.dot(w1, x, preferred_element_type=jnp.float32) + b1, 0.0)   # (24, TB)
        h2 = jnp.maximum(
            jnp.dot(w2, h1, preferred_element_type=jnp.float32) + b2, 0.0)  # (16, TB)

        # Layer 3 (K<=16, N=1): broadcast-mul + sublane reduce on VPU/XLU
        # instead of a <1%-utilised MXU matmul.
        z = jnp.sum(h2 * w3, axis=0, keepdims=True) + b3                    # (1, TB)
        o_ref[...] = jax.nn.sigmoid(z)

    return kernel


def pack_params(params):
    """Pack PyTorch-layout params (w1 (20,D), b1 (20,), w2 (10,20), b2 (10,),
    w3 (1,10), b3 (1,)) into one f32 (64,128) slab.  Build this ONCE and reuse
    it across forward calls."""
    w1, b1, w2, b2, w3, b3 = [jnp.asarray(p, jnp.float32) for p in params]
    d_in = w1.shape[1]
    if d_in > _MAX_D_IN:
        raise ValueError(f"input_dim={d_in} exceeds packed-slab capacity {_MAX_D_IN}")
    slab = jnp.zeros((_SLAB_R, _SLAB_C), jnp.float32)
    slab = slab.at[0:20, 0:d_in].set(w1)
    slab = slab.at[0:20, _BIAS_COL:_BIAS_COL + 1].set(b1.reshape(20, 1))
    slab = slab.at[24:34, 0:20].set(w2)
    slab = slab.at[24:34, _BIAS_COL:_BIAS_COL + 1].set(b2.reshape(10, 1))
    slab = slab.at[40:50, 0:1].set(w3.reshape(10, 1))
    slab = slab.at[40:41, _BIAS_COL:_BIAS_COL + 1].set(b3.reshape(1, 1))
    return slab


def _choose_tile(batch, tile_b):
    """Lane-aligned batch tile: large enough to amortise the ~0.35 us per-step
    overhead, small enough to fit double-buffered inside a 32 MiB VMEM budget,
    and (for large batches) leaving >= 4 grid steps so v7x's two TensorCores
    both get work on the "parallel" batch axis."""
    if batch <= 128:
        return batch                              # single full block (block == array)
    tile_b = max(128, _round_up(tile_b, 128))
    quarter = _round_up(_cdiv(_round_up(batch, 128), 4), 128)
    return max(128, min(tile_b, quarter))


def bin_classification_forward_fm(xt, slab, *, tile_b=32768):
    """Fast path.  xt: feature-major (input_dim, batch), f32 or bf16.
    slab: pre-packed parameter slab from pack_params().  No wrapper-side
    copies of xt at all; ragged batches are handled by Pallas partial blocks.
    Returns (1, batch) f32 sigmoid probabilities."""
    d_in, batch = xt.shape
    tb = _choose_tile(batch, tile_b)
    grid = (_cdiv(batch, tb),)

    return pl.pallas_call(
        _make_kernel(d_in),
        out_shape=jax.ShapeDtypeStruct((1, batch), jnp.float32),
        grid_spec=pltpu.PrefetchScalarGridSpec(
            num_scalar_prefetch=0,
            grid=grid,
            in_specs=[
                # x tile streams along the lane-dense batch axis
                pl.BlockSpec((d_in, tb), lambda i: (0, i)),
                # packed params: constant block index -> stays resident in VMEM
                pl.BlockSpec((_SLAB_R, _SLAB_C), lambda i: (0, 0)),
            ],
            out_specs=pl.BlockSpec((1, tb), lambda i: (0, i)),
        ),
        compiler_params=pltpu.CompilerParams(
            dimension_semantics=("parallel",),      # megacore split on v7x
            vmem_limit_bytes=32 * 1024 * 1024,      # fits v7x's 64 MiB with margin
        ),
    )(xt, slab)


def bin_classification_forward(x, params=None, *, slab=None, tile_b=32768):
    """PyTorch-interface wrapper.  x: (batch, input_dim) f32; params in PyTorch
    layout, or pass a cached `slab` from pack_params().  Returns (batch, 1).

    NOTE: this wrapper performs exactly ONE transpose of x (the kernel wants
    the batch on the 128-lane axis) and no pad materialisation.  If your data
    is already feature-major, call bin_classification_forward_fm directly and
    skip that extra HBM pass entirely."""
    if slab is None:
        slab = pack_params(params)
    xt = jnp.asarray(x, jnp.float32).T          # single pass, no zero-pad scatter
    out_t = bin_classification_forward_fm(xt, slab, tile_b=tile_b)
    return out_t.T                              # (batch, 1)


def init_params(key, input_dim):
    """Deterministic init mimicking PyTorch nn.Linear (uniform +/- 1/sqrt(fan_in)),
    stored in PyTorch layout: W (out_features, in_features), b (out_features,)."""
    def linear_init(k, fan_in, fan_out):
        kw, kb = jax.random.split(k)
        bound = 1.0 / jnp.sqrt(jnp.float32(fan_in))
        w = jax.random.uniform(kw, (fan_out, fan_in), jnp.float32, -bound, bound)
        b = jax.random.uniform(kb, (fan_out,), jnp.float32, -bound, bound)
        return w, b

    k1, k2, k3 = jax.random.split(key, 3)
    w1, b1 = linear_init(k1, input_dim, 20)
    w2, b2 = linear_init(k2, 20, 10)
    w3, b3 = linear_init(k3, 10, 1)
    return (w1, b1, w2, b2, w3, b3)


def reference_forward(x, params):
    w1, b1, w2, b2, w3, b3 = params
    h1 = jnp.maximum(x @ w1.T + b1, 0.0)
    h2 = jnp.maximum(h1 @ w2.T + b2, 0.0)
    return jax.nn.sigmoid(h2 @ w3.T + b3)


if __name__ == "__main__":
    key = jax.random.PRNGKey(0)
    k_x, k_p, k_x2 = jax.random.split(key, 3)

    input_dim = 11   # wine-quality feature count
    params = init_params(k_p, input_dim)
    slab = pack_params(params)   # built once, reused across every call below

    # Small batch: single full block, no padding anywhere.
    batch = 8
    x = jax.random.normal(k_x, (batch, input_dim), dtype=jnp.float32)
    out = jax.block_until_ready(bin_classification_forward(x, slab=slab))
    ref = reference_forward(x, params)
    assert out.shape == (batch, 1), out.shape
    assert jnp.allclose(out, ref, atol=1e-5, rtol=1e-5)

    # Multi-step grid + ragged tail: grid = cdiv(300,128) = 3, last block partial.
    batch2 = 300
    x2 = jax.random.normal(k_x2, (batch2, input_dim), dtype=jnp.float32)
    out2 = jax.block_until_ready(
        bin_classification_forward(x2, slab=slab, tile_b=128))
    ref2 = reference_forward(x2, params)
    assert out2.shape == (batch2, 1), out2.shape
    assert jnp.allclose(out2, ref2, atol=1e-5, rtol=1e-5)

    # Feature-major fast path with bf16 streaming of x (optional perf item):
    # no wrapper ops at all between the caller's array and the kernel.
    xt2_bf16 = x2.T.astype(jnp.bfloat16)
    out3 = jax.block_until_ready(
        bin_classification_forward_fm(xt2_bf16, slab, tile_b=128))
    assert out3.shape == (1, batch2), out3.shape
    assert jnp.allclose(out3.T, ref2, atol=5e-2, rtol=5e-2)

    print("KERNEL_OK")
</pallas_src>

<mosaic_0001>
module attributes {stable_mosaic.version = 11 : i64} {
  func.func @kernel(%arg0: i32, %arg1: memref<11x8xf32, #tpu.memory_space<vmem>>, %arg2: memref<64x128xf32, #tpu.memory_space<vmem>>, %arg3: memref<1x8xf32, #tpu.memory_space<vmem>>) attributes {dimension_semantics = [#tpu.dimension_semantics<parallel>], iteration_bounds = array<i64: 1>, scalar_prefetch = 0 : i64, scratch_operands = 0 : i64, tpu.core_type = #tpu.core_type<tc>, window_params = [{transform_indices = @transform_0, window_bounds = array<i64: 11, 8>}, {pipeline_mode = #tpu.pipeline_mode<synchronous>, transform_indices = @transform_1, window_bounds = array<i64: 64, 128>}, {transform_indices = @transform_2, window_bounds = array<i64: 1, 8>}]} {
    %c0 = arith.constant 0 : index
    %c0_0 = arith.constant 0 : index
    %0 = vector.load %arg1[%c0, %c0_0] : memref<11x8xf32, #tpu.memory_space<vmem>>, vector<11x8xf32>
    %c0_1 = arith.constant 0 : index
    %c0_2 = arith.constant 0 : index
    %1 = vector.load %arg2[%c0_1, %c0_2] : memref<64x128xf32, #tpu.memory_space<vmem>>, vector<24x11xf32>
    %c0_3 = arith.constant 0 : index
    %c124 = arith.constant 124 : index
    %2 = vector.load %arg2[%c0_3, %c124] : memref<64x128xf32, #tpu.memory_space<vmem>>, vector<24x1xf32>
    %c24 = arith.constant 24 : index
    %c0_4 = arith.constant 0 : index
    %3 = vector.load %arg2[%c24, %c0_4] : memref<64x128xf32, #tpu.memory_space<vmem>>, vector<16x24xf32>
    %c24_5 = arith.constant 24 : index
    %c124_6 = arith.constant 124 : index
    %4 = vector.load %arg2[%c24_5, %c124_6] : memref<64x128xf32, #tpu.memory_space<vmem>>, vector<16x1xf32>
    %c40 = arith.constant 40 : index
    %c0_7 = arith.constant 0 : index
    %5 = vector.load %arg2[%c40, %c0_7] : memref<64x128xf32, #tpu.memory_space<vmem>>, vector<16x1xf32>
    %c40_8 = arith.constant 40 : index
    %c124_9 = arith.constant 124 : index
    %6 = vector.load %arg2[%c40_8, %c124_9] : memref<64x128xf32, #tpu.memory_space<vmem>>, vector<1x1xf32>
    %cst = arith.constant dense<0.000000e+00> : vector<24x8xf32>
    %7 = tpu.matmul %1, %0, %cst {dimension_numbers = #tpu.dot_dimension_numbers<[1], [0], [0], [1], [0, 0, 1, 1], [], []>} : vector<24x11xf32>, vector<11x8xf32>, vector<24x8xf32> -> vector<24x8xf32>
    %8 = vector.broadcast %2 : vector<24x1xf32> to vector<24x8xf32>
    %9 = arith.addf %7, %8 : vector<24x8xf32>
    %cst_10 = arith.constant 0.000000e+00 : f32
    %10 = vector.broadcast %cst_10 : f32 to vector<24x8xf32>
    %11 = arith.maximumf %9, %10 : vector<24x8xf32>
    %cst_11 = arith.constant dense<0.000000e+00> : vector<16x8xf32>
    %12 = tpu.matmul %3, %11, %cst_11 {dimension_numbers = #tpu.dot_dimension_numbers<[1], [0], [0], [1], [0, 0, 1, 1], [], []>} : vector<16x24xf32>, vector<24x8xf32>, vector<16x8xf32> -> vector<16x8xf32>
    %13 = vector.broadcast %4 : vector<16x1xf32> to vector<16x8xf32>
    %14 = arith.addf %12, %13 : vector<16x8xf32>
    %cst_12 = arith.constant 0.000000e+00 : f32
    %15 = vector.broadcast %cst_12 : f32 to vector<16x8xf32>
    %16 = arith.maximumf %14, %15 : vector<16x8xf32>
    %17 = vector.broadcast %5 : vector<16x1xf32> to vector<16x8xf32>
    %18 = arith.mulf %16, %17 : vector<16x8xf32>
    %cst_13 = arith.constant dense<0.000000e+00> : vector<8xf32>
    %19 = vector.multi_reduction <add>, %18, %cst_13 [0] : vector<16x8xf32> to vector<8xf32>
    %20 = vector.shape_cast %19 : vector<8xf32> to vector<1x8xf32>
    %21 = vector.broadcast %6 : vector<1x1xf32> to vector<1x8xf32>
    %22 = arith.addf %20, %21 : vector<1x8xf32>
    %23 = arith.negf %22 : vector<1x8xf32>
    %24 = math.exp %23 : vector<1x8xf32>
    %cst_14 = arith.constant 1.000000e+00 : f32
    %25 = vector.broadcast %cst_14 : f32 to vector<1x8xf32>
    %26 = arith.addf %25, %24 : vector<1x8xf32>
    %27 = arith.divf %25, %26 : vector<1x8xf32>
    %c0_15 = arith.constant 0 : index
    %c0_16 = arith.constant 0 : index
    %28 = vector.load %arg3[%c0_15, %c0_16] : memref<1x8xf32, #tpu.memory_space<vmem>>, vector<1x8xf32>
    tpu.vector_store %arg3[%c0_15, %c0_16], %27 {strides = array<i32>} : memref<1x8xf32, #tpu.memory_space<vmem>>, vector<1x8xf32>,
    return
  }
  func.func @transform_0(%arg0: i32) -> (i32, i32) {
    %c0_i32 = arith.constant 0 : i32
    %c0_i32_0 = arith.constant 0 : i32
    return %c0_i32, %arg0 : i32, i32
  }
  func.func @transform_1(%arg0: i32) -> (i32, i32) {
    %c0_i32 = arith.constant 0 : i32
    %c0_i32_0 = arith.constant 0 : i32
    %c0_i32_1 = arith.constant 0 : i32
    return %c0_i32, %c0_i32_0 : i32, i32
  }
  func.func @transform_2(%arg0: i32) -> (i32, i32) {
    %c0_i32 = arith.constant 0 : i32
    %c0_i32_0 = arith.constant 0 : i32
    return %c0_i32, %arg0 : i32, i32
  }
}

</mosaic_0001>

<bundles_post_ra>
// kernel: tpu_custom_call.1
= control target key start
LH: loop header
LB: loop body
LE: loop exit
PB: predicated region body
PF: predicated region fallthrough
CT: control target
= control target key end

     0   :  { %7 = vsyncpa [#allocation3], 0  ;;  %s463_s0 = inlined_call_operand.vmem [shape: f32[11,8], index: 0, kind: input, shape index: {}]   ;;  %s464_s1 = inlined_call_operand.hbm [shape: f32[64,128], index: 1, kind: input, shape index: {}]   ;;  %s465_s2 = inlined_call_operand.hbm [shape: f32[1,8], index: 2, kind: output, shape index: {}]  }
   0x1   :  { %8 = vsyncpa [#allocation4], 0  ;;  %s403_s9 = smov [#allocation2]   ;;  %s355_s13 = scalar_lea.hbm %s464_s1, 1024 }
   0x2   :  { %s16_s10 = sshll.u32 %s403_s9, 4  ;;  %p356_p0 = scmp.ne.s32.totalorder %s464_s1, %s355_s13  ;;  %s17_s10 = int_to_ptr.vmem [resolvable:$true] %s16_s10 }
   0x3   :  { %p359_p1 = scmp.lt.u32.totalorder %s355_s13, %s464_s1 }
   0x5   :  { %p361_p2 = pnand %p359_p1, %p356_p0 }
   0x7   :  { %364 = shalt.err (!%p361_p2)
}
   0x8   :  { %s365_s18 = scalar_lea.vmem %s17_s10, 1024  ;;  %p370_p4 = scmp.lt.s32.totalorder %s17_s10, %s17_s10 }
   0x9   :  { %p366_p3 = scmp.ne.s32.totalorder %s17_s10, %s365_s18  ;;  %p371_p5 = scmp.lt.s32.totalorder %s365_s18, %s365_s18 }
   0xb   :  { %p372_p6 = por %p371_p5, %p370_p4 }
   0xd   :  { %p373_p7 = pnand %p372_p6, %p366_p3 }
   0xf   :  { %376 = shalt.err (!%p373_p7)
}
  0x10   :  { %s404_s19 = smov 128   ;;  %s405_s20 = smov 8  }
  0x11   :  { %22 = dma.hbm_to_vmem [thread:$0]  %s464_s1, 1024, %s17_s10, [#allocation3], %s404_s19, %s404_s19, %s405_s20  }
  0x12   :  { %399 = dma.done.wait [#allocation3], 1024  }
  0x13   :  { %400 = vsyncadd [#allocation3], 4294966272  ;;  %v406_v0 = vmov 0.0|0.0   ;;  %vm407_vm0 = vmmov 0   ;;  %v408_v1 = vmov 0.0   ;;  %v409_v2 = vmov 124  }
  0x14   :  { %327 = vmatprep.subr.bf16.mxu0 %v406_v0  ;;  %309 = vmatprep.mubr.msk.f32.mxu0 %vm407_vm0, %v408_v1  ;;  %vm58_vm1 = vcmask 1042432   ;;  %vm410_vm2 = vmmov 1   ;;  %v26_v3 = vld [vmem:[%s463_s0] sm:$0xff]  ;;  %v27_v4 = vld [vmem:[%s463_s0 + $0x8] sm:$0x7]  ;;  %v30_v7 = vld [vmem:[#allocation2 + $0x10] sm:$0xff] }
  0x15   :  { %345 = vset.pattern.permute.xlu0 %v409_v2  ;;  %346 = vset.pattern.permute.xlu1 %v409_v2  ;;  %vm329_vm3 = vmpackc.low %vm58_vm1, %vm410_vm2  ;;  %v28_v5 = vld [vmem:[#allocation2] sm:$0xff]  ;;  %v328_v6 = vpack.c.bf16 %v27_v4, %v26_v3  ;;  %vm51_vm4 = vcmask 89088   ;;  %v31_v8 = vld [vmem:[#allocation2 + $0x18] sm:$0xff]  ;;  %vm155_vm5 = vcmask 195584   ;;  %v411_v13 = vmov 0   ;;  %s412_s0 = smov [#allocation5]  }
  0x16   :  { %38 = vperm.xlu0 %345, %v28_v5   ;;  %48 = vperm.xlu1 %346, %v30_v7   ;;  %v29_v9 = vld [vmem:[#allocation2 + $0x8] sm:$0xff]  ;;  %v32_v10 = vld [vmem:[#allocation2 + $0x20] sm:$0xff]  ;;  %v34_v11 = vld [vmem:[#allocation2 + $0x30] sm:$0xff]  ;;  %vm249_vm6 = vcmask 64512   ;;  %s279_s26 = sshll.u32 %s412_s0, 4  ;;  %vm271_vm7 = vcmask 57344   ;;  %s280_s26 = int_to_ptr.vmem [resolvable:$true] %s279_s26 }
  0x17   :  { %330 = vmatpush3.bf16.msk.msra.mxu0 %vm329_vm3, %v328_v6  ;;  %324 = vmatprep.mubr.msk.f32.mxu1 %vm155_vm5, %v31_v8  ;;  %v33_v12 = vld [vmem:[#allocation2 + $0x28] sm:$0xff]  ;;  %s377_s27 = scalar_lea.vmem %s280_s26, 16  ;;  %s381_s28 = scalar_lea.vmem %s280_s26, 32 }
  0x18   :  { %v35_v14 = vld [vmem:[#allocation2 + $0x28] sm:$0x1]  ;;  %p378_p8 = scmp.ne.s32.totalorder %s280_s26, %s377_s27  ;;  %p382_p9 = scmp.lt.s32.totalorder %s280_s26, %s280_s26 }
  0x19   :  { %p383_p10 = scmp.lt.s32.totalorder %s381_s28, %s377_s27 }
  0x1a   :  { %43 = vperm.xlu0 %345, %v29_v9   ;;  %310 = vmatmul.mubr.msk.f32.vlgmr.msra.gmra.mrb[0].mxu0 %vm51_vm4, %v28_v5 }
  0x1b   :  { %147 = vperm.xlu1 %346, %v31_v8   ;;  %312 = vmatprep.mubr.msk.f32.mxu0 %vm407_vm0, %v408_v1  ;;  %p384_p11 = por %p383_p10, %p382_p9 }
  0x1d   :  { %p385_p12 = pnand %p384_p11, %p378_p8 }
  0x1e   :  { %152 = vperm.xlu0 %345, %v32_v10   ;;  %313 = vmatmul.mubr.msk.f32.gmra.mrb[2].mxu0 %vm51_vm4, %v29_v9 }
  0x1f   :  { %315 = vmatprep.mubr.msk.f32.mxu0 %vm407_vm0, %v408_v1  ;;  %347 = vset.pattern.permute.xlu1 %v411_v13 }
  0x20   :  { %239 = vperm.xlu1 %347, %v33_v12  }
  0x22   :  { %316 = vmatmul.mubr.msk.f32.gmra.mrb[4].mxu0 %vm51_vm4, %v30_v7  ;;  %348 = vset.pattern.permute.xlu0 %v411_v13 }
  0x23   :  { %244 = vperm.xlu0 %348, %v34_v11  }
  0x24   :  { %349 = vset.pattern.permute.xlu1 %v409_v2 }
  0x25   :  { %261 = vperm.xlu1 %349, %v35_v14  }
  0x27   :  { %350 = vset.pattern.permute.xlu0 %v409_v2 }
  0x95   :  { %v39_v15 = vpop.permute.xlu0 %38  ;;  %v49_v25 = vpop.permute.xlu1 %48 }
  0x99   :  { %v44_v19 = vpop.permute.xlu0 %43 }
  0x9a   :  { %v148_v32 = vpop.permute.xlu1 %147 }
  0x9d   :  { %v153_v31 = vpop.permute.xlu0 %152 }
  0x9f   :  { %v240_v39 = vpop.permute.xlu1 %239 }
  0xa2   :  { %v245_v37 = vpop.permute.xlu0 %244 }
  0xa4   :  { %v262_v51 = vpop.permute.xlu1 %261 }
  0xed   :  { %v128_v16 = vpop.f32.mrb[0].mxu0 }
  0xee   :  { %v311_v17 = vpop.f32.mrb[1].mxu0  ;;  %v129_v18 = vadd.f32 %v128_v16, %v39_v15 }
  0xf0   :  { %v142_v23 = vmax.f32 %v129_v18, 0.0 }
  0xf1   :  { %v133_v20 = vpop.f32.mrb[2].mxu0 }
  0xf2   :  { %v134_v21 = vadd.f32 %v133_v20, %v44_v19  ;;  %v314_v22 = vpop.f32.mrb[3].mxu0 }
  0xf4   :  { %v143_v24 = vmax.f32 %v134_v21, 0.0 }
  0xf5   :  { %v138_v26 = vpop.f32.mrb[4].mxu0 }
  0xf6   :  { %v139_v27 = vadd.f32 %v138_v26, %v49_v25  ;;  %v317_v28 = vpop.f32.mrb[5].mxu0  ;;  %v331_v29 = vpack.c.bf16 %v143_v24, %v142_v23 }
  0xf8   :  { %v144_v30 = vmax.f32 %v139_v27, 0.0  ;;  %332 = vmatprep.subr.bf16.mxu1 %v331_v29 }
  0xf9   :  { %334 = vmatpush3.bf16.msra.mxu1 %v331_v29 }
  0xfa   :  { %322 = vmatprep.subr.mxu1 %v144_v30 }
  0xfd   :  { %323 = vmatpush3.msra.mxu1 %v144_v30 }
  0xfe   :  { %325 = vmatmul.mubr.msk.f32.vlgmr.msra.gmra.mrb[0].mxu1 %vm155_vm5, %v32_v10 }
 0x1d1   :  { %v326_v33 = vpop.f32.mrb[0].mxu1 }
 0x1d2   :  { %v232_v34 = vadd.f32 %v326_v33, %v153_v31  ;;  %v226_v35 = vpop.f32.mrb[1].mxu1 }
 0x1d3   :  { %v227_v36 = vadd.f32 %v226_v35, %v148_v32 }
 0x1d4   :  { %v236_v38 = vmax.f32 %v232_v34, 0.0 }
 0x1d5   :  { %v235_v40 = vmax.f32 %v227_v36, 0.0 }
 0x1d6   :  { %v248_v41 = vmul.f32 %v245_v37, %v236_v38 }
 0x1d7   :  { %v247_v42 = vmul.f32 %v240_v39, %v235_v40 }
 0x1d8   :  { %v251_v43 = vsel %vm249_vm6, %v248_v41, 0.0 }
 0x1d9   :  { %v250_v44 = vsel %vm249_vm6, %v247_v42, 0.0 }
 0x1da   :  { %v252_v45 = vadd.f32 %v251_v43, %v250_v44 }
 0x1dc   :  { %v253_v46 = vrot.slane %v252_v45, 4 }
 0x1de   :  { %v254_v47 = vadd.f32 %v253_v46, %v252_v45 }
 0x1e0   :  { %v255_v48 = vrot.slane %v254_v47, 2 }
 0x1e2   :  { %v256_v49 = vadd.f32 %v255_v48, %v254_v47 }
 0x1e4   :  { %v257_v50 = vrot.slane %v256_v49, 1 }
 0x1e6   :  { %v258_v52 = vadd.f32 %v257_v50, %v256_v49 }
 0x1e8   :  { %v264_v53 = vadd.f32 %v262_v51, %v258_v52 }
 0x1ea   :  { %v294_v54 = vmul.f32 -1.442695, %v264_v53 }
 0x1ec   :  { %351 = vpow2.f32 %v294_v54 }
 0x1f6   :  { %v352_v55 = vpop.eup %351 }
 0x1f7   :  { %v268_v56 = vadd.f32 1.0, %v352_v55 }
 0x1f9   :  { %353 = vrcp.f32 %v268_v56 }
 0x203   :  { %v354_v57 = vpop.eup %353 }
 0x204   :  { %272 = vst.msk [vmem:[#allocation5] sm:$0x1] %vm271_vm7, %v354_v57 }
 0x205   :  { %388 = shalt.err (!%p385_p12)
}
 0x206   :  { %s389_s3 = scalar_lea.hbm %s465_s2, 16 }
 0x207   :  { %p390_p13 = scmp.ne.s32.totalorder %s465_s2, %s389_s3  ;;  %p393_p0 = scmp.lt.u32.totalorder %s389_s3, %s465_s2 }
 0x209   :  { %p395_p1 = pnand %p393_p0, %p390_p13 }
 0x20b   :  { %398 = shalt.err (!%p395_p1)
}
 0x20c   :  { %282 = dma.vmem_to_hbm [thread:$0]  %s280_s26, 16, %s465_s2, [#allocation4]  }
 0x20d   :  { %401 = dma.done.wait [#allocation4], 16  }
 0x20e   :  { %402 = vsyncadd [#allocation4], 4294967280 }
 0x20f   :  { %286 = vsyncpa [#allocation3], 1 }
 0x210   :  { %287 = vsyncpa [#allocation4], 1 }

</bundles_post_ra>
